<compile_context>
chip_gen: v6e
topology: v6e:2x2x1
jax: 0.10.0
libtpu: 0.0.40
codegen_flags: <defaults>
</compile_context>

<pallas_src>
import functools

import jax
import jax.numpy as jnp
from jax import lax
from jax.experimental import pallas as pl
from jax.experimental.pallas import tpu as pltpu

# Each batch tile writes one lane-dense (8, 128) f32 slab holding the tile's
# partial sum (broadcast); only element [0, 0] is read back by the wrapper.
_OUT_SUB, _OUT_LANE = 8, 128

_NEG_INIT = -1e30            # big-finite init for running max (avoid -inf NaNs)
_WS_CAP = 16 * 1024 * 1024   # target for the double-buffered input working set
_LANEPAD = 128 * 4           # a (block_b, 1) 32-bit tile pads its lanes to 128
_MAX_BLOCK_B = 4096


# ---------------------------------------------------------------- utilities --
def _cdiv(a, b):
    return -(-a // b)


def _round_up(x, m):
    return _cdiv(x, m) * m


def _sublane(dtype):
    # sublane packing: f32 -> 8, bf16 -> 16, int8/fp8 -> 32
    return max(8, 256 // (jnp.dtype(dtype).itemsize * 8))


def _tpu_vmem_bytes():
    try:
        return int(pltpu.get_tpu_info().vmem_capacity_bytes)
    except Exception:
        return 128 * 1024 * 1024


def _choose_blocks(B, C, theta_isz, y_isz, dense, sub, phys_vmem):
    """Pick (block_b, block_c): full-C tiles when they fit the VMEM budget,
    otherwise C-axis tiling for the online-logsumexp path."""
    ws = min(phys_vmem // 4, _WS_CAP)          # double-buffered inputs budget
    if dense:
        row_cost = 2 * C * (theta_isz + y_isz) + 3 * _LANEPAD        # + scratch
    else:
        row_cost = 2 * C * theta_isz + (2 + 3) * _LANEPAD            # labels+scratch
    rows = ws // row_cost
    if rows >= sub:
        block_c = C                             # single C tile
        block_b = min((rows // sub) * sub, _MAX_BLOCK_B)
    else:
        block_c = None                          # derive after block_b is fixed
        block_b = _round_up(64, sub)
    # clamp to the batch and rebalance so grid_b >= 2 (v7x megacore) with
    # near-equal tiles (e.g. B=1536 -> 768+768, not 1024+512).
    if B <= sub:
        block_b = B                             # full-dim exception
    else:
        block_b = min(block_b, _round_up(B, sub))
    min_grid_b = 2 if B >= 2 * sub else 1
    grid_b = max(_cdiv(B, block_b), min_grid_b)
    block_b = max(min(_round_up(_cdiv(B, grid_b), sub), block_b), 1)
    if block_c is None:
        per_col = 2 * block_b * (theta_isz + y_isz)
        fixed = block_b * _LANEPAD * (3 if dense else 5)
        cols = max((ws - fixed) // per_col, 128)
        block_c = min((cols // 128) * 128, _round_up(C, 128))
    return int(block_b), int(block_c)


# ------------------------------------------------------------------ kernels --
def _fy_label_kernel(theta_ref, labels_ref, out_ref, m_sc, z_sc, pick_sc, *,
                     batch, n_classes, block_b, block_c,
                     need_col_mask, need_row_mask):
    """FY loss partial sum for integer-label targets (online logsumexp over C)."""
    i = pl.program_id(0)
    j = pl.program_id(1)

    @pl.when(j == 0)
    def _():
        m_sc[...] = jnp.full(m_sc.shape, _NEG_INIT, dtype=jnp.float32)
        z_sc[...] = jnp.zeros(z_sc.shape, dtype=jnp.float32)
        pick_sc[...] = jnp.zeros(pick_sc.shape, dtype=jnp.float32)

    theta = theta_ref[...].astype(jnp.float32)                     # (TB, TC)
    col = lax.broadcasted_iota(jnp.int32, theta.shape, 1) + j * block_c
    if need_col_mask:
        theta = jnp.where(col < n_classes, theta, _NEG_INIT)

    # online logsumexp update (== <theta, softmax(theta)> - Omega(softmax))
    m_prev = m_sc[...]                                             # (TB, 1)
    m_new = jnp.maximum(m_prev, jnp.max(theta, axis=-1, keepdims=True))
    z_sc[...] = (z_sc[...] * jnp.exp(m_prev - m_new)
                 + jnp.sum(jnp.exp(theta - m_new), axis=-1, keepdims=True))
    m_sc[...] = m_new

    # theta[row, label] if the label lands in this C tile (select, no one-hot mul)
    pick_sc[...] += jnp.sum(jnp.where(col == labels_ref[...], theta, 0.0),
                            axis=-1, keepdims=True)

    @pl.when(j == pl.num_programs(1) - 1)
    def _():
        loss = m_sc[...] + jnp.log(z_sc[...]) - pick_sc[...]       # (TB, 1)
        if need_row_mask:
            row = lax.broadcasted_iota(jnp.int32, loss.shape, 0) + i * block_b
            loss = jnp.where(row < batch, loss, 0.0)               # padding rows
        out_ref[...] = jnp.full(out_ref.shape, jnp.sum(loss), dtype=jnp.float32)


def _fy_dense_kernel(theta_ref, ytrue_ref, out_ref, m_sc, z_sc, rest_sc, *,
                     batch, n_classes, block_b, block_c,
                     need_col_mask, need_row_mask):
    """FY loss partial sum for dense probability targets (online logsumexp)."""
    i = pl.program_id(0)
    j = pl.program_id(1)

    @pl.when(j == 0)
    def _():
        m_sc[...] = jnp.full(m_sc.shape, _NEG_INIT, dtype=jnp.float32)
        z_sc[...] = jnp.zeros(z_sc.shape, dtype=jnp.float32)
        rest_sc[...] = jnp.zeros(rest_sc.shape, dtype=jnp.float32)

    theta = theta_ref[...].astype(jnp.float32)                     # (TB, TC)
    y = ytrue_ref[...].astype(jnp.float32)                         # native dtype in
    if need_col_mask:
        col = lax.broadcasted_iota(jnp.int32, theta.shape, 1) + j * block_c
        valid = col < n_classes
        theta = jnp.where(valid, theta, _NEG_INIT)
        y = jnp.where(valid, y, 0.0)

    m_prev = m_sc[...]
    m_new = jnp.maximum(m_prev, jnp.max(theta, axis=-1, keepdims=True))
    z_sc[...] = (z_sc[...] * jnp.exp(m_prev - m_new)
                 + jnp.sum(jnp.exp(theta - m_new), axis=-1, keepdims=True))
    m_sc[...] = m_new

    # Omega(y) - <y, theta> fused; y == 0 contributes exactly 0 via the multiply.
    log_y = jnp.log(jnp.maximum(y, 1e-30))
    rest_sc[...] += jnp.sum(y * (log_y - theta), axis=-1, keepdims=True)

    @pl.when(j == pl.num_programs(1) - 1)
    def _():
        loss = m_sc[...] + jnp.log(z_sc[...]) + rest_sc[...]       # (TB, 1)
        if need_row_mask:
            row = lax.broadcasted_iota(jnp.int32, loss.shape, 0) + i * block_b
            loss = jnp.where(row < batch, loss, 0.0)
        out_ref[...] = jnp.full(out_ref.shape, jnp.sum(loss), dtype=jnp.float32)


# ------------------------------------------------------------------ wrapper --
@functools.partial(jax.jit, static_argnames=("weights", "block_b", "block_c"))
def fy_loss(theta, y_true, weights="average", block_b=None, block_c=None):
    B, C = theta.shape
    dense = (y_true.ndim == 2)
    if not dense:
        if y_true.ndim != 1:
            raise ValueError("Invalid shape for y_true.")
        if not jnp.issubdtype(y_true.dtype, jnp.integer):
            raise ValueError("y_true should contain integers.")

    phys = _tpu_vmem_bytes()
    theta_isz = jnp.dtype(theta.dtype).itemsize
    y_isz = jnp.dtype(y_true.dtype).itemsize if dense else 0
    sub = max(_sublane(theta.dtype), _sublane(y_true.dtype) if dense else 8)

    auto_b, auto_c = _choose_blocks(B, C, theta_isz, y_isz, dense, sub, phys)
    block_b = auto_b if block_b is None else int(block_b)
    block_c = auto_c if block_c is None else int(block_c)
    block_b = min(block_b, B)
    block_c = min(block_c, C)

    grid_b = _cdiv(B, block_b)
    grid_c = _cdiv(C, block_c)
    need_row_mask = (B % block_b) != 0
    need_col_mask = (C % block_c) != 0

    out_shape = jax.ShapeDtypeStruct((grid_b, _OUT_SUB, _OUT_LANE), jnp.float32)
    out_spec = pl.BlockSpec((1, _OUT_SUB, _OUT_LANE), lambda i, j: (i, 0, 0))
    out_bytes = grid_b * _OUT_SUB * _OUT_LANE * 4
    theta_spec = pl.BlockSpec((block_b, block_c), lambda i, j: (i, j))
    scratch = [pltpu.VMEM((block_b, 1), jnp.float32)] * 3
    cparams = pltpu.CompilerParams(
        dimension_semantics=("parallel", "arbitrary"),
        vmem_limit_bytes=int(min(phys * 3 // 4, 64 * 1024 * 1024)),
    )
    common = dict(batch=B, n_classes=C, block_b=block_b, block_c=block_c,
                  need_col_mask=need_col_mask, need_row_mask=need_row_mask)

    if dense:
        kernel = functools.partial(_fy_dense_kernel, **common)
        cost = pl.CostEstimate(
            flops=int(7 * B * C),
            transcendentals=int(2 * B * C + 2 * B),
            bytes_accessed=int(B * C * (theta_isz + y_isz) + out_bytes),
        )
        partials = pl.pallas_call(
            kernel,
            out_shape=out_shape,
            grid_spec=pltpu.PrefetchScalarGridSpec(
                num_scalar_prefetch=0,
                grid=(grid_b, grid_c),
                in_specs=[theta_spec,
                          pl.BlockSpec((block_b, block_c), lambda i, j: (i, j))],
                out_specs=out_spec,
                scratch_shapes=scratch,
            ),
            compiler_params=cparams,
            cost_estimate=cost,
        )(theta, y_true)                     # no wrapper-side upcast of y_true
    else:
        labels = y_true.astype(jnp.int32).reshape(B, 1)
        kernel = functools.partial(_fy_label_kernel, **common)
        cost = pl.CostEstimate(
            flops=int(5 * B * C),
            transcendentals=int(B * C + 2 * B),
            bytes_accessed=int(B * C * theta_isz + B * 4 + out_bytes),
        )
        partials = pl.pallas_call(
            kernel,
            out_shape=out_shape,
            grid_spec=pltpu.PrefetchScalarGridSpec(
                num_scalar_prefetch=0,
                grid=(grid_b, grid_c),
                in_specs=[theta_spec,
                          pl.BlockSpec((block_b, 1), lambda i, j: (i, 0))],
                out_specs=out_spec,
                scratch_shapes=scratch,
            ),
            compiler_params=cparams,
            cost_estimate=cost,
        )(theta, labels)

    total = jnp.sum(partials[:, 0, 0])       # tiny: grid_b scalars
    if weights == "average":
        return total / B
    return total


# ---------------------------------------------------------------- reference --
def fy_loss_ref(theta, y_true, weights="average"):
    """Pure-JAX reference matching the PyTorch semantics."""
    theta = theta.astype(jnp.float32)
    p = jax.nn.softmax(theta, axis=1)
    omega_p = jnp.sum(p * jnp.log(p), axis=1)
    ret = jnp.sum(theta * p, axis=1) - omega_p
    if y_true.ndim == 1:
        ret = ret - theta[jnp.arange(theta.shape[0]), y_true]
    else:
        y = y_true.astype(jnp.float32)
        omega_y = jnp.sum(jnp.where(y > 0, y * jnp.log(jnp.maximum(y, 1e-30)), 0.0), axis=1)
        ret = ret + omega_y - jnp.sum(y * theta, axis=1)
    return jnp.mean(ret) if weights == "average" else jnp.sum(ret)


if __name__ == "__main__":
    key = jax.random.PRNGKey(0)
    k1, k2, k3, k4, k5 = jax.random.split(key, 5)

    # --- Case 1: moderate C, single C tile, auto block sizes -----------------
    B, C = 32, 128
    theta = jax.random.normal(k1, (B, C), dtype=jnp.float32)
    labels = jax.random.randint(k2, (B,), 0, C, dtype=jnp.int32)
    y_dense = jax.nn.softmax(jax.random.normal(k3, (B, C), dtype=jnp.float32), axis=1)

    out = jax.block_until_ready(fy_loss(theta, labels))
    ref = fy_loss_ref(theta, labels)
    assert jnp.allclose(out, ref, atol=1e-4, rtol=1e-4), (out, ref)

    out = jax.block_until_ready(fy_loss(theta, y_dense))
    ref = fy_loss_ref(theta, y_dense)
    assert jnp.allclose(out, ref, atol=1e-4, rtol=1e-4), (out, ref)

    # bf16 dense targets stream in their native dtype (no wrapper upcast)
    y_bf16 = y_dense.astype(jnp.bfloat16)
    out = jax.block_until_ready(fy_loss(theta, y_bf16))
    ref = fy_loss_ref(theta, y_bf16.astype(jnp.float32))
    assert jnp.allclose(out, ref, atol=1e-3, rtol=1e-3), (out, ref)

    # --- Case 2: ragged batch, explicit small tiles, 'sum' weighting ---------
    Br = 20
    out = jax.block_until_ready(fy_loss(theta[:Br], labels[:Br], weights="sum", block_b=8))
    ref = fy_loss_ref(theta[:Br], labels[:Br], weights="sum")
    assert jnp.allclose(out, ref, atol=1e-3, rtol=1e-4), (out, ref)

    # --- Case 3: C-axis tiling (online logsumexp) with ragged class dim ------
    B2, C2 = 24, 320                      # 320 = 2*128 + 64 -> last C tile masked
    theta2 = jax.random.normal(k4, (B2, C2), dtype=jnp.float32)
    labels2 = jax.random.randint(k5, (B2,), 0, C2, dtype=jnp.int32)
    y2 = jax.nn.softmax(theta2 * 0.5, axis=1)

    out = jax.block_until_ready(fy_loss(theta2, labels2, block_b=8, block_c=128))
    ref = fy_loss_ref(theta2, labels2)
    assert jnp.allclose(out, ref, atol=1e-4, rtol=1e-4), (out, ref)

    out = jax.block_until_ready(fy_loss(theta2, y2, weights="sum", block_b=8, block_c=128))
    ref = fy_loss_ref(theta2, y2, weights="sum")
    assert jnp.allclose(out, ref, atol=1e-3, rtol=1e-4), (out, ref)

    print("KERNEL_OK")
</pallas_src>

<mosaic_0001>
module attributes {stable_mosaic.version = 11 : i64} {
  func.func @_fy_label_kernel(%arg0: i32, %arg1: i32, %arg2: memref<16x128xf32, #tpu.memory_space<vmem>>, %arg3: memref<16x1xi32, #tpu.memory_space<vmem>>, %arg4: memref<1x8x128xf32, #tpu.memory_space<vmem>>, %arg5: memref<16x1xf32, #tpu.memory_space<vmem>>, %arg6: memref<16x1xf32, #tpu.memory_space<vmem>>, %arg7: memref<16x1xf32, #tpu.memory_space<vmem>>) attributes {dimension_semantics = [#tpu.dimension_semantics<parallel>, #tpu.dimension_semantics<arbitrary>], iteration_bounds = array<i64: 2, 1>, scalar_prefetch = 0 : i64, scratch_operands = 3 : i64, tpu.core_type = #tpu.core_type<tc>, window_params = [{transform_indices = @transform_0, window_bounds = array<i64: 16, 128>}, {transform_indices = @transform_1, window_bounds = array<i64: 16, 1>}, {transform_indices = @transform_2, window_bounds = array<i64: 1, 8, 128>}]} {
    %c0_i32 = arith.constant 0 : i32
    %0 = arith.cmpi eq, %arg1, %c0_i32 : i32
    %1 = arith.extui %0 : i1 to i32
    %c0_i32_0 = arith.constant 0 : i32
    %2 = arith.cmpi ne, %1, %c0_i32_0 : i32
    scf.if %2 {
      %cst_21 = arith.constant -1.000000e+30 : f32
      %37 = vector.broadcast %cst_21 : f32 to vector<16x1xf32>
      %c0_22 = arith.constant 0 : index
      %c0_23 = arith.constant 0 : index
      %38 = vector.load %arg5[%c0_22, %c0_23] : memref<16x1xf32, #tpu.memory_space<vmem>>, vector<16x1xf32>
      tpu.vector_store %arg5[%c0_22, %c0_23], %37 {strides = array<i32>} : memref<16x1xf32, #tpu.memory_space<vmem>>, vector<16x1xf32>,
      %cst_24 = arith.constant 0.000000e+00 : f32
      %39 = vector.broadcast %cst_24 : f32 to vector<16x1xf32>
      %c0_25 = arith.constant 0 : index
      %c0_26 = arith.constant 0 : index
      %40 = vector.load %arg6[%c0_25, %c0_26] : memref<16x1xf32, #tpu.memory_space<vmem>>, vector<16x1xf32>
      tpu.vector_store %arg6[%c0_25, %c0_26], %39 {strides = array<i32>} : memref<16x1xf32, #tpu.memory_space<vmem>>, vector<16x1xf32>,
      %cst_27 = arith.constant 0.000000e+00 : f32
      %41 = vector.broadcast %cst_27 : f32 to vector<16x1xf32>
      %c0_28 = arith.constant 0 : index
      %c0_29 = arith.constant 0 : index
      %42 = vector.load %arg7[%c0_28, %c0_29] : memref<16x1xf32, #tpu.memory_space<vmem>>, vector<16x1xf32>
      tpu.vector_store %arg7[%c0_28, %c0_29], %41 {strides = array<i32>} : memref<16x1xf32, #tpu.memory_space<vmem>>, vector<16x1xf32>,
    } else {
    }
    %c0 = arith.constant 0 : index
    %c0_1 = arith.constant 0 : index
    %3 = vector.load %arg2[%c0, %c0_1] : memref<16x128xf32, #tpu.memory_space<vmem>>, vector<16x128xf32>
    %4 = tpu.iota {dimensions = array<i32: 1>} : vector<16x128xi32>
    %c128_i32 = arith.constant 128 : i32
    %5 = arith.muli %arg1, %c128_i32 : i32
    %6 = vector.broadcast %5 : i32 to vector<16x128xi32>
    %7 = arith.addi %4, %6 : vector<16x128xi32>
    %c0_2 = arith.constant 0 : index
    %c0_3 = arith.constant 0 : index
    %8 = vector.load %arg5[%c0_2, %c0_3] : memref<16x1xf32, #tpu.memory_space<vmem>>, vector<16x1xf32>
    %cst = arith.constant dense<0xFF800000> : vector<16xf32>
    %9 = vector.multi_reduction <maximumf>, %3, %cst [1] : vector<16x128xf32> to vector<16xf32>
    %10 = vector.shape_cast %9 : vector<16xf32> to vector<16x1xf32>
    %11 = arith.maximumf %8, %10 : vector<16x1xf32>
    %c0_4 = arith.constant 0 : index
    %c0_5 = arith.constant 0 : index
    %12 = vector.load %arg6[%c0_4, %c0_5] : memref<16x1xf32, #tpu.memory_space<vmem>>, vector<16x1xf32>
    %13 = arith.subf %8, %11 : vector<16x1xf32>
    %14 = math.exp %13 : vector<16x1xf32>
    %15 = arith.mulf %12, %14 : vector<16x1xf32>
    %16 = vector.broadcast %11 : vector<16x1xf32> to vector<16x128xf32>
    %17 = arith.subf %3, %16 : vector<16x128xf32>
    %18 = math.exp %17 : vector<16x128xf32>
    %cst_6 = arith.constant dense<0.000000e+00> : vector<16xf32>
    %19 = vector.multi_reduction <add>, %18, %cst_6 [1] : vector<16x128xf32> to vector<16xf32>
    %20 = vector.shape_cast %19 : vector<16xf32> to vector<16x1xf32>
    %21 = arith.addf %15, %20 : vector<16x1xf32>
    %c0_7 = arith.constant 0 : index
    %c0_8 = arith.constant 0 : index
    %22 = vector.load %arg6[%c0_7, %c0_8] : memref<16x1xf32, #tpu.memory_space<vmem>>, vector<16x1xf32>
    tpu.vector_store %arg6[%c0_7, %c0_8], %21 {strides = array<i32>} : memref<16x1xf32, #tpu.memory_space<vmem>>, vector<16x1xf32>,
    %c0_9 = arith.constant 0 : index
    %c0_10 = arith.constant 0 : index
    %23 = vector.load %arg5[%c0_9, %c0_10] : memref<16x1xf32, #tpu.memory_space<vmem>>, vector<16x1xf32>
    tpu.vector_store %arg5[%c0_9, %c0_10], %11 {strides = array<i32>} : memref<16x1xf32, #tpu.memory_space<vmem>>, vector<16x1xf32>,
    %c0_11 = arith.constant 0 : index
    %c0_12 = arith.constant 0 : index
    %24 = vector.load %arg7[%c0_11, %c0_12] : memref<16x1xf32, #tpu.memory_space<vmem>>, vector<16x1xf32>
    %c0_13 = arith.constant 0 : index
    %c0_14 = arith.constant 0 : index
    %25 = vector.load %arg3[%c0_13, %c0_14] : memref<16x1xi32, #tpu.memory_space<vmem>>, vector<16x1xi32>
    %26 = vector.broadcast %25 : vector<16x1xi32> to vector<16x128xi32>
    %27 = arith.cmpi eq, %7, %26 : vector<16x128xi32>
    %cst_15 = arith.constant 0.000000e+00 : f32
    %28 = vector.broadcast %cst_15 : f32 to vector<16x128xf32>
    %29 = arith.select %27, %3, %28 : vector<16x128xi1>, vector<16x128xf32>
    %cst_16 = arith.constant dense<0.000000e+00> : vector<16xf32>
    %30 = vector.multi_reduction <add>, %29, %cst_16 [1] : vector<16x128xf32> to vector<16xf32>
    %31 = vector.shape_cast %30 : vector<16xf32> to vector<16x1xf32>
    %32 = arith.addf %24, %31 : vector<16x1xf32>
    %c0_17 = arith.constant 0 : index
    %c0_18 = arith.constant 0 : index
    %33 = vector.load %arg7[%c0_17, %c0_18] : memref<16x1xf32, #tpu.memory_space<vmem>>, vector<16x1xf32>
    tpu.vector_store %arg7[%c0_17, %c0_18], %32 {strides = array<i32>} : memref<16x1xf32, #tpu.memory_space<vmem>>, vector<16x1xf32>,
    %c0_i32_19 = arith.constant 0 : i32
    %34 = arith.cmpi eq, %arg1, %c0_i32_19 : i32
    %35 = arith.extui %34 : i1 to i32
    %c0_i32_20 = arith.constant 0 : i32
    %36 = arith.cmpi ne, %35, %c0_i32_20 : i32
    scf.if %36 {
      %c0_21 = arith.constant 0 : index
      %c0_22 = arith.constant 0 : index
      %37 = vector.load %arg5[%c0_21, %c0_22] : memref<16x1xf32, #tpu.memory_space<vmem>>, vector<16x1xf32>
      %c0_23 = arith.constant 0 : index
      %c0_24 = arith.constant 0 : index
      %38 = vector.load %arg6[%c0_23, %c0_24] : memref<16x1xf32, #tpu.memory_space<vmem>>, vector<16x1xf32>
      %39 = math.log %38 : vector<16x1xf32>
      %40 = arith.addf %37, %39 : vector<16x1xf32>
      %c0_25 = arith.constant 0 : index
      %c0_26 = arith.constant 0 : index
      %41 = vector.load %arg7[%c0_25, %c0_26] : memref<16x1xf32, #tpu.memory_space<vmem>>, vector<16x1xf32>
      %42 = arith.subf %40, %41 : vector<16x1xf32>
      %43 = vector.shape_cast %42 : vector<16x1xf32> to vector<1x16x1xf32>
      %cst_27 = arith.constant dense<0.000000e+00> : vector<1xf32>
      %44 = vector.multi_reduction <add>, %43, %cst_27 [1, 2] : vector<1x16x1xf32> to vector<1xf32>
      %45 = vector.shape_cast %44 : vector<1xf32> to vector<1x1x1xf32>
      %46 = vector.extract %45[0, 0, 0] : f32 from vector<1x1x1xf32>
      %47 = vector.broadcast %46 : f32 to vector<1x8x128xf32>
      %c0_28 = arith.constant 0 : index
      %c0_29 = arith.constant 0 : index
      %c0_30 = arith.constant 0 : index
      %48 = vector.load %arg4[%c0_28, %c0_29, %c0_30] : memref<1x8x128xf32, #tpu.memory_space<vmem>>, vector<1x8x128xf32>
      tpu.vector_store %arg4[%c0_28, %c0_29, %c0_30], %47 {strides = array<i32>} : memref<1x8x128xf32, #tpu.memory_space<vmem>>, vector<1x8x128xf32>,
    } else {
    }
    return
  }
  func.func @transform_0(%arg0: i32, %arg1: i32) -> (i32, i32) {
    %c0_i32 = arith.constant 0 : i32
    return %arg0, %arg1 : i32, i32
  }
  func.func @transform_1(%arg0: i32, %arg1: i32) -> (i32, i32) {
    %c0_i32 = arith.constant 0 : i32
    %c0_i32_0 = arith.constant 0 : i32
    return %arg0, %c0_i32 : i32, i32
  }
  func.func @transform_2(%arg0: i32, %arg1: i32) -> (i32, i32, i32) {
    %c0_i32 = arith.constant 0 : i32
    %c0_i32_0 = arith.constant 0 : i32
    %c0_i32_1 = arith.constant 0 : i32
    return %arg0, %c0_i32, %c0_i32_0 : i32, i32, i32
  }
}

</mosaic_0001>

<bundles_post_ra>
// kernel: fy_loss.1
= control target key start
LH: loop header
LB: loop body
LE: loop exit
PB: predicated region body
PF: predicated region fallthrough
CT: control target
= control target key end

     0   :  { %s478_s9 = smov 0   ;;  %s480_s10 = smov 0   ;;  %s533_s0 = inlined_call_operand.vmem [shape: f32[32,128], index: 0, kind: input, shape index: {}]   ;;  %s534_s1 = inlined_call_operand.vmem [shape: s32[32,1], index: 1, kind: input, shape index: {}]   ;;  %s535_s2 = inlined_call_operand.vmem [shape: f32[2,8,128], index: 2, kind: output, shape index: {}]  }
   0x1   :  { %s482_s11 = smov 0  }
   0x2 LB: > { %s24_s12 = sadd.s32 1, %s454_s10  ;;  %p385_p0 = scmp.ge.s32.totalorder %s458_s11, 1  ;;  %s458_s11 = sphi %s482_s11, %s12_s11   ;;  %s454_s10 = sphi %s480_s10, %s537_s10   ;;  %s450_s9 = sphi %s478_s9, %s536_s9  }
   0x3   : > { %p26_p1 = scmp.ge.s32.totalorder %s24_s12, 2  ;;  %p141_p2 = scmp.lt.s32.totalorder %s458_s11, 3 }
   0x5   : > { %s539_s12 = smov (%p26_p1, %s24_s12), 0  ;;  %p142_p3 = pnand %p385_p0, %p141_p2 }
   0x6   : > { %s386_s13 = sshll.u32 (!%p142_p3), %s450_s9, 1  ;;  %p185_p5 = scmp.lt.s32.totalorder (!%p142_p3), %s450_s9, 1 }
   0x7   : > { %145 = sbr.rel (%p142_p3) target bundleno = 675 (0x2a3), region = 28  ;;  %p171_p4 = scmp.lt.s32.totalorder (!%p142_p3), %s386_s13, 3 }
   0xc   : > { %vm193_vm0 = vcmask 7168   ;;  %v460_v0 = vmov -1e+30   ;;  %s541_s13 = smov (!%p171_p4, %s386_s13), 3  ;;  %v461_v3 = vmov 0   ;;  %v462_v4 = vmov 0.0  }
   0xd   : > { %194 = vst.msk [vmem:[#allocation2] sm:$0xff] %vm193_vm0, %v460_v0  ;;  %195 = vst.msk [vmem:[#allocation2 + $0x8] sm:$0xff] %vm193_vm0, %v460_v0  ;;  %s387_s14 = sshll.u32 %s541_s13, 3  ;;  %422 = vset.pattern.permute.xlu1 %v461_v3  ;;  %423 = vset.pattern.permute.xlu0 %v461_v3  ;;  %v202_v15 = vlaneseq  ;;  %s543_s9 = smov (!%p185_p5, %s450_s9), 1 }
   0xe   : > { %s177_s17 = scalar_lea.vmem %s533_s0, %s387_s14  ;;  %s183_s20 = scalar_lea.vmem %s534_s1, %s387_s14  ;;  %196 = vst.msk [vmem:[#allocation3] sm:$0xff] %vm193_vm0, %v462_v4  ;;  %197 = vst.msk [vmem:[#allocation3 + $0x8] sm:$0xff] %vm193_vm0, %v462_v4 }
   0xf   : > { %v200_v1 = vld [vmem:[%s177_s17] sm:$0xff]  ;;  %v201_v2 = vld [vmem:[%s177_s17 + $0x8] sm:$0xff]  ;;  %198 = vst.msk [vmem:[#allocation4] sm:$0xff] %vm193_vm0, %v462_v4  ;;  %199 = vst.msk [vmem:[#allocation4 + $0x8] sm:$0xff] %vm193_vm0, %v462_v4  ;;  %v203_v16 = vand.u32 127, %v202_v15  ;;  %s390_s21 = sshll.u32 %s543_s9, 3 }
  0x10   : > { %209 = vmax.xlane.f32.xlu0 %v200_v1  ;;  %v254_v5 = vld [vmem:[%s183_s20] sm:$0xff]  ;;  %v255_v14 = vld [vmem:[%s183_s20 + $0x8] sm:$0xff]  ;;  %s188_s24 = scalar_lea.vmem %s535_s2, %s390_s21 }
  0x14   : > { %211 = vmax.xlane.f32.xlu0 %v201_v2  ;;  %v207_v6 = vld [vmem:[#allocation2] sm:$0xff]  ;;  %v208_v9 = vld [vmem:[#allocation2 + $0x8] sm:$0xff] }
  0x15   : > { %v215_v35 = vld [vmem:[#allocation3] sm:$0xff]  ;;  %v216_v39 = vld [vmem:[#allocation3 + $0x8] sm:$0xff] }
  0x16   : > { %v252_v29 = vld [vmem:[#allocation4] sm:$0xff]  ;;  %v253_v44 = vld [vmem:[#allocation4 + $0x8] sm:$0xff] }
  0x2a   : > { %257 = vperm.xlu0 %423, %v254_v5  }
  0x99   : > { %v210_v7 = vpop.xlane.xlu0 %209 }
  0x9a   : > { %v213_v8 = vmax.f32 %v207_v6, %v210_v7 }
  0x9c   : > { %v217_v10 = vsub.f32 %v207_v6, %v213_v8  ;;  %250 = vst.msk [vmem:[#allocation2] sm:$0xff] %vm193_vm0, %v213_v8  ;;  %227 = vperm.xlu1 %422, %v213_v8  }
  0x9d   : > { %v212_v11 = vpop.xlane.xlu0 %211 }
  0x9e   : > { %v214_v12 = vmax.f32 %v208_v9, %v212_v11  ;;  %v219_v32 = vmul.f32 1.442695, %v217_v10 }
  0xa0   : > { %v218_v13 = vsub.f32 %v208_v9, %v214_v12  ;;  %251 = vst.msk [vmem:[#allocation2 + $0x8] sm:$0xff] %vm193_vm0, %v214_v12  ;;  %232 = vperm.xlu1 %422, %v214_v12  }
  0xa2   : > { %v221_v33 = vmul.f32 1.442695, %v218_v13 }
  0xa3   : > { %v277_v51 = vld [vmem:[#allocation2] sm:$0xff] }
  0xa4   : > { %260 = vperm.xlu1 %422, %v255_v14  }
  0xa5   : > { %v258_v17 = vpop.permute.xlu0 %257 }
  0xa6   : > { %vm262_vm1 = vcmp.eq.s32.totalorder %v203_v16, %v258_v17 }
  0xa7   : > { %v264_v18 = vsel %vm262_vm1, %v200_v1, 0.0  ;;  %v278_v56 = vld [vmem:[#allocation2 + $0x8] sm:$0xff] }
  0xa8   : > { %266 = vadd.xlane.f32.xlu0 %v264_v18 }
 0x117   : > { %v228_v19 = vpop.permute.xlu1 %227 }
 0x118   : > { %v235_v20 = vsub.f32 %v200_v1, %v228_v19 }
 0x11a   : > { %v237_v21 = vmul.f32 1.442695, %v235_v20 }
 0x11b   : > { %v233_v22 = vpop.permute.xlu1 %232 }
 0x11c   : > { %424 = vpow2.f32 %v237_v21  ;;  %v236_v23 = vsub.f32 %v201_v2, %v233_v22 }
 0x11e   : > { %v239_v24 = vmul.f32 1.442695, %v236_v23 }
 0x11f   : > { %v261_v26 = vpop.permute.xlu1 %260 }
 0x120   : > { %426 = vpow2.f32 %v239_v24  ;;  %vm263_vm2 = vcmp.eq.s32.totalorder %v203_v16, %v261_v26 }
 0x121   : > { %v265_v28 = vsel %vm263_vm2, %v201_v2, 0.0  ;;  %428 = vpow2.f32 %v219_v32 }
 0x122   : > { %430 = vpow2.f32 %v221_v33 }
 0x129   : > { %v425_v25 = vpop.eup %424 }
 0x12a   : > { %241 = vadd.xlane.f32.xlu1 %v425_v25 }
 0x12d   : > { %v427_v27 = vpop.eup %426 }
 0x12e   : > { %243 = vadd.xlane.f32.xlu1 %v427_v27  ;;  %v429_v34 = vpop.eup %428 }
 0x12f   : > { %v223_v36 = vmul.f32 %v429_v34, %v215_v35  ;;  %v431_v37 = vpop.eup %430 }
 0x130   : > { %v224_v41 = vmul.f32 %v431_v37, %v216_v39 }
 0x131   : > { %v267_v30 = vpop.xlane.xlu0 %266 }
 0x132   : > { %268 = vadd.xlane.f32.xlu1 %v265_v28  ;;  %v270_v31 = vadd.f32 %v267_v30, %v252_v29 }
 0x134   : > { %272 = vst.msk [vmem:[#allocation4] sm:$0xff] %vm193_vm0, %v270_v31 }
 0x13b   : > { %v287_v54 = vld [vmem:[#allocation4] sm:$0xff] }
 0x1b3   : > { %v242_v38 = vpop.xlane.xlu1 %241 }
 0x1b4   : > { %v245_v40 = vadd.f32 %v242_v38, %v223_v36 }
 0x1b6   : > { %248 = vst.msk [vmem:[#allocation3] sm:$0xff] %vm193_vm0, %v245_v40 }
 0x1b7   : > { %v244_v42 = vpop.xlane.xlu1 %243 }
 0x1b8   : > { %v246_v43 = vadd.f32 %v244_v42, %v224_v41 }
 0x1ba   : > { %249 = vst.msk [vmem:[#allocation3 + $0x8] sm:$0xff] %vm193_vm0, %v246_v43 }
 0x1bb   : > { %v269_v45 = vpop.xlane.xlu1 %268 }
 0x1bc   : > { %v271_v46 = vadd.f32 %v269_v45, %v253_v44 }
 0x1bd   : > { %v279_v47 = vld [vmem:[#allocation3] sm:$0xff] }
 0x1be   : > { %273 = vst.msk [vmem:[#allocation4 + $0x8] sm:$0xff] %vm193_vm0, %v271_v46  ;;  %432 = vlog2.f32 %v279_v47 }
 0x1c1   : > { %v280_v48 = vld [vmem:[#allocation3 + $0x8] sm:$0xff] }
 0x1c2   : > { %434 = vlog2.f32 %v280_v48 }
 0x1c5   : > { %v288_v59 = vld [vmem:[#allocation4 + $0x8] sm:$0xff] }
 0x1cb   : > { %v433_v49 = vpop.eup %432 }
 0x1cc   : > { %v282_v50 = vmul.f32 0.6931472, %v433_v49 }
 0x1ce   : > { %v285_v52 = vadd.f32 %v282_v50, %v277_v51 }
 0x1cf   : > { %v435_v53 = vpop.eup %434 }
 0x1d0   : > { %v284_v55 = vmul.f32 0.6931472, %v435_v53  ;;  %v289_v58 = vsub.f32 %v285_v52, %v287_v54 }
 0x1d2   : > { %v286_v57 = vadd.f32 %v284_v55, %v278_v56  ;;  %v291_v61 = vsel %vm193_vm0, %v289_v58, 0.0 }
 0x1d4   : > { %v290_v60 = vsub.f32 %v286_v57, %v288_v59 }
 0x1d6   : > { %v292_v62 = vsel %vm193_vm0, %v290_v60, 0.0 }
 0x1d7   : > { %v293_v63 = vadd.f32 %v292_v62, %v291_v61 }
 0x1d9   : > { %294 = vadd.xlane.f32.xlu1 %v293_v63 }
 0x262   : > { %v295_v0 = vpop.xlane.xlu1 %294 }
 0x263   : > { %v296_v1 = vrot.slane %v295_v0, 4 }
 0x265   : > { %v297_v2 = vadd.f32 %v296_v1, %v295_v0 }
 0x267   : > { %v298_v3 = vrot.slane %v297_v2, 2 }
 0x269   : > { %v299_v4 = vadd.f32 %v298_v3, %v297_v2 }
 0x26b   : > { %v300_v5 = vrot.slane %v299_v4, 1 }
 0x26d   : > { %v301_v6 = vadd.f32 %v300_v5, %v299_v4 }
 0x26f   : > { %393 = vpush %v301_v6 }
 0x2a0   : > { %s394_s25 = spop %393 }
 0x2a1   : > { %v303_v7 = vstv %s394_s25 }
 0x2a2   : > { %304 = vst [vmem:[%s188_s24] sm:$0xff] %v303_v7 }
 0x2a3 PF: > { %s12_s11 = sadd.s32 1, %s458_s11   ;;  %s536_s9 = smov %s454_s10 }
 0x2a4   : > { %p9_p6 = scmp.ge.s32.totalorder %s12_s11, 4   ;;  %s537_s10 = smov %s539_s12 }
 0x2a6   :  { %11 = sbr.rel (!%p9_p6) target bundleno = 2 (0x2), region = 69 }

</bundles_post_ra>
